<compile_context>
chip_gen: v7x
topology: tpu7x:2x2x1
jax: 0.10.0
libtpu: 0.0.40
codegen_flags: <defaults>
</compile_context>

<pallas_src>
import functools

import jax
import jax.numpy as jnp
from jax.experimental import pallas as pl
from jax.experimental.pallas import tpu as pltpu

IN_F, H1, H2, H3, OUT_F = 36, 64, 32, 16, 1
LEAKY_SLOPE = 0.01  # PyTorch F.leaky_relu default negative_slope


def _leaky_relu(x):
    return jnp.where(x > 0, x, LEAKY_SLOPE * x)


def _round_up(n, m):
    return ((n + m - 1) // m) * m


def _mlp_kernel(x_ref,
                w1_ref, b1_ref,
                w2_ref, b2_ref,
                w3_ref, b3_ref,
                w4_ref, b4_ref,
                o_ref):
    """Whole MLP forward for one batch tile, feature-major (batch on lanes)."""
    cd = w1_ref.dtype      # MXU compute dtype (bf16 on the fast path)
    ew = b1_ref.dtype      # elementwise dtype (bf16 on v6e/v7x, f32 on v5e)

    x = x_ref[...].astype(cd)                                   # (T, 36)

    # Layer 1 (36 -> 64): contract the feature axis of both operands so the
    # result is already feature-major (64, T); no transpose of x needed.
    h = jnp.einsum("of,tf->ot", w1_ref[...], x,
                   preferred_element_type=jnp.float32)          # (64, T) f32
    h = _leaky_relu(h.astype(ew) + b1_ref[...]).astype(cd)      # (64, T)

    # Layer 2 (64 -> 32): (out,in) @ (in,T), stays feature-major.
    h = jnp.dot(w2_ref[...], h, preferred_element_type=jnp.float32)
    h = _leaky_relu(h.astype(ew) + b2_ref[...]).astype(cd)      # (32, T)

    # dropout(p=0) -> identity at inference; nothing to do.

    # Layer 3 (32 -> 16)
    h = jnp.dot(w3_ref[...], h, preferred_element_type=jnp.float32)
    h = _leaky_relu(h.astype(ew) + b3_ref[...]).astype(cd)      # (16, T)

    # Output layer (16 -> 1): lane-dense (1, T) row; sigmoid in f32 (EUP).
    z = jnp.dot(w4_ref[...], h, preferred_element_type=jnp.float32)
    o_ref[...] = jax.nn.sigmoid(z + b4_ref[...].astype(jnp.float32))


def _choose_tile(B, tile_b):
    """128-aligned batch tile; >= 2 (even) grid steps for B > 256 (v7x megacore)."""
    tile_cap = max(128, _round_up(int(tile_b), 128))
    if B <= 256:
        return _round_up(max(B, 1), 128)
    n_steps = max(2, pl.cdiv(B, tile_cap))   # at least 2 -> both v7x TCs busy
    if n_steps % 2:                          # even step count -> no straggler
        n_steps += 1
    return _round_up(pl.cdiv(B, n_steps), 128)


def _bf16_vpu_ok():
    """True on chips with a packed bf16 VPU/EUP path (v6e / v7x and newer)."""
    try:
        kind = jax.devices()[0].device_kind.lower()
    except Exception:
        return False
    return not any(old in kind for old in ("v2", "v3", "v4", "v5"))


@functools.partial(jax.jit,
                   static_argnames=("tile_b", "compute_dtype", "elementwise_dtype"))
def _pricing_model_forward(x, params, *, tile_b, compute_dtype, elementwise_dtype):
    B = x.shape[0]
    cd = jnp.dtype(compute_dtype)
    ew = jnp.dtype(elementwise_dtype)

    tile = _choose_tile(B, tile_b)
    b_pad = _round_up(B, tile)
    if b_pad != B:
        x = jnp.pad(x, ((0, b_pad - B), (0, 0)))
    n_tiles = b_pad // tile

    # Weights in (out, in) orientation, MXU compute dtype; biases as (out, 1)
    # so they broadcast over the lane (batch) axis, in the elementwise dtype.
    w1 = params["w1"].astype(cd); b1 = params["b1"].astype(ew)
    w2 = params["w2"].astype(cd); b2 = params["b2"].astype(ew)
    w3 = params["w3"].astype(cd); b3 = params["b3"].astype(ew)
    w4 = params["w4"].astype(cd); b4 = params["b4"].astype(jnp.float32)

    def resident(arr):
        # Full block + constant index_map -> stays resident in VMEM, no per-step DMA.
        return pl.BlockSpec(arr.shape, lambda i: (0, 0))

    flops = 2 * b_pad * (IN_F * H1 + H1 * H2 + H2 * H3 + H3 * OUT_F)
    bytes_accessed = (b_pad * (IN_F * x.dtype.itemsize + 4)
                      + sum(int(a.size) * a.dtype.itemsize
                            for a in (w1, b1, w2, b2, w3, b3, w4, b4)))
    cost = pl.CostEstimate(flops=flops, transcendentals=b_pad,
                           bytes_accessed=bytes_accessed)

    out = pl.pallas_call(
        _mlp_kernel,
        out_shape=jax.ShapeDtypeStruct((1, b_pad), jnp.float32),
        grid=(n_tiles,),
        in_specs=[
            pl.BlockSpec((tile, IN_F), lambda i: (i, 0)),   # x batch tile
            resident(w1), resident(b1),
            resident(w2), resident(b2),
            resident(w3), resident(b3),
            resident(w4), resident(b4),
        ],
        out_specs=pl.BlockSpec((1, tile), lambda i: (0, i)),  # lane-dense row
        compiler_params=pltpu.CompilerParams(
            dimension_semantics=("parallel",),   # shards grid steps across TCs (v7x)
        ),
        cost_estimate=cost,
    )(x, w1, b1, w2, b2, w3, b3, w4, b4)

    # Lane-dense (1, b_pad) row -> (B, 1); drop batch padding (layout plumbing).
    return out[0, :B].reshape(B, OUT_F)


def pricing_model_forward(x, params, tile_b=4096,
                          compute_dtype=jnp.bfloat16, elementwise_dtype=None):
    """x: (B, 36) f32 or bf16.  params: dict w1,b1,...,w4,b4.  Returns (B, 1) f32."""
    B = x.shape[0]
    if B == 0:                                   # degenerate-batch guard
        return jnp.zeros((0, OUT_F), jnp.float32)
    cd = jnp.dtype(compute_dtype)
    if elementwise_dtype is None:
        # bf16 elementwise only where the VPU has a packed bf16 path.
        ew = jnp.dtype(jnp.bfloat16) if (cd == jnp.bfloat16 and _bf16_vpu_ok()) \
            else jnp.dtype(jnp.float32)
    else:
        ew = jnp.dtype(elementwise_dtype)
    return _pricing_model_forward(x, params, tile_b=int(tile_b),
                                  compute_dtype=cd, elementwise_dtype=ew)


def init_params(key):
    """Deterministic init mimicking nn.Linear's default U(-1/sqrt(fan_in), +)."""
    def uniform(k, shape, bound):
        return jax.random.uniform(k, shape, jnp.float32, -bound, bound)

    ks = jax.random.split(key, 8)
    return dict(
        # PyTorch (out_features, in_features) orientation for every layer;
        # biases as (out_features, 1) -> broadcast over the lane (batch) axis.
        w1=uniform(ks[0], (H1, IN_F), 1.0 / jnp.sqrt(IN_F)),
        b1=uniform(ks[1], (H1, 1), 1.0 / jnp.sqrt(IN_F)),
        w2=uniform(ks[2], (H2, H1), 1.0 / jnp.sqrt(H1)),
        b2=uniform(ks[3], (H2, 1), 1.0 / jnp.sqrt(H1)),
        w3=uniform(ks[4], (H3, H2), 1.0 / jnp.sqrt(H2)),
        b3=uniform(ks[5], (H3, 1), 1.0 / jnp.sqrt(H2)),
        w4=uniform(ks[6], (OUT_F, H3), 1.0 / jnp.sqrt(H3)),
        b4=uniform(ks[7], (OUT_F, 1), 1.0 / jnp.sqrt(H3)),
    )


def _reference_forward(x, p):
    h = _leaky_relu(x @ p["w1"].T + p["b1"].T)
    h = _leaky_relu(h @ p["w2"].T + p["b2"].T)
    h = _leaky_relu(h @ p["w3"].T + p["b3"].T)
    return jax.nn.sigmoid(h @ p["w4"].T + p["b4"].T)


if __name__ == "__main__":
    key = jax.random.PRNGKey(0)
    kx, kp = jax.random.split(key)

    params = init_params(kp)

    # Small, non-tile-multiple batch -> exercises padding + multi-step grid.
    B = 300
    x = jax.random.normal(kx, (B, IN_F), dtype=jnp.float32)
    y_ref = _reference_forward(x, params)

    # f32 validation path (f32 MXU decomposition + f32 elementwise), 3 grid steps.
    y32 = jax.block_until_ready(
        pricing_model_forward(x, params, tile_b=128, compute_dtype=jnp.float32))
    assert y32.shape == (B, OUT_F)
    assert jnp.allclose(y32, y_ref, atol=1e-5, rtol=1e-5)

    # Default fast path: bf16 matmuls (f32 accumulation), per-chip elementwise
    # dtype, megacore-aware 2-step grid.
    ybf = jax.block_until_ready(pricing_model_forward(x, params))
    assert ybf.shape == (B, OUT_F)
    assert jnp.allclose(ybf, y_ref, atol=2e-2, rtol=2e-2)

    # Larger batch: bigger tiles, still 2 even grid steps.
    B2 = 2500
    x2 = jax.random.normal(kx, (B2, IN_F), dtype=jnp.float32)
    y2 = jax.block_until_ready(pricing_model_forward(x2, params))
    assert y2.shape == (B2, OUT_F)
    assert jnp.allclose(y2, _reference_forward(x2, params), atol=2e-2, rtol=2e-2)

    print("KERNEL_OK")
</pallas_src>

<mosaic_0001>
module attributes {stable_mosaic.version = 11 : i64} {
  func.func @_mlp_kernel(%arg0: i32, %arg1: memref<128x36xf32, #tpu.memory_space<vmem>>, %arg2: memref<64x36xf32, #tpu.memory_space<vmem>>, %arg3: memref<64x1xf32, #tpu.memory_space<vmem>>, %arg4: memref<32x64xf32, #tpu.memory_space<vmem>>, %arg5: memref<32x1xf32, #tpu.memory_space<vmem>>, %arg6: memref<16x32xf32, #tpu.memory_space<vmem>>, %arg7: memref<16x1xf32, #tpu.memory_space<vmem>>, %arg8: memref<1x16xf32, #tpu.memory_space<vmem>>, %arg9: memref<1x1xf32, #tpu.memory_space<vmem>>, %arg10: memref<1x128xf32, #tpu.memory_space<vmem>>) attributes {dimension_semantics = [#tpu.dimension_semantics<parallel>], iteration_bounds = array<i64: 3>, scalar_prefetch = 0 : i64, scratch_operands = 0 : i64, tpu.core_type = #tpu.core_type<tc>, window_params = [{transform_indices = @transform_0, window_bounds = array<i64: 128, 36>}, {pipeline_mode = #tpu.pipeline_mode<synchronous>, transform_indices = @transform_1, window_bounds = array<i64: 64, 36>}, {pipeline_mode = #tpu.pipeline_mode<synchronous>, transform_indices = @transform_2, window_bounds = array<i64: 64, 1>}, {pipeline_mode = #tpu.pipeline_mode<synchronous>, transform_indices = @transform_3, window_bounds = array<i64: 32, 64>}, {pipeline_mode = #tpu.pipeline_mode<synchronous>, transform_indices = @transform_4, window_bounds = array<i64: 32, 1>}, {pipeline_mode = #tpu.pipeline_mode<synchronous>, transform_indices = @transform_5, window_bounds = array<i64: 16, 32>}, {pipeline_mode = #tpu.pipeline_mode<synchronous>, transform_indices = @transform_6, window_bounds = array<i64: 16, 1>}, {pipeline_mode = #tpu.pipeline_mode<synchronous>, transform_indices = @transform_7, window_bounds = array<i64: 1, 16>}, {pipeline_mode = #tpu.pipeline_mode<synchronous>, transform_indices = @transform_8, window_bounds = array<i64: 1, 1>}, {transform_indices = @transform_9, window_bounds = array<i64: 1, 128>}]} {
    %c0 = arith.constant 0 : index
    %c0_0 = arith.constant 0 : index
    %0 = vector.load %arg1[%c0, %c0_0] : memref<128x36xf32, #tpu.memory_space<vmem>>, vector<128x36xf32>
    %c0_1 = arith.constant 0 : index
    %c0_2 = arith.constant 0 : index
    %1 = vector.load %arg2[%c0_1, %c0_2] : memref<64x36xf32, #tpu.memory_space<vmem>>, vector<64x36xf32>
    "tpu.trace_start"() <{level = 10 : i32, message = "of,tf->ot"}> : () -> ()
    %cst = arith.constant dense<0.000000e+00> : vector<64x128xf32>
    %2 = tpu.matmul %1, %0, %cst {dimension_numbers = #tpu.dot_dimension_numbers<[1], [1], [0], [0], [0, 0, 1, 0], [], []>} : vector<64x36xf32>, vector<128x36xf32>, vector<64x128xf32> -> vector<64x128xf32>
    "tpu.trace_stop"() : () -> ()
    %c0_3 = arith.constant 0 : index
    %c0_4 = arith.constant 0 : index
    %3 = vector.load %arg3[%c0_3, %c0_4] : memref<64x1xf32, #tpu.memory_space<vmem>>, vector<64x1xf32>
    %4 = vector.broadcast %3 : vector<64x1xf32> to vector<64x128xf32>
    %5 = arith.addf %2, %4 : vector<64x128xf32>
    %cst_5 = arith.constant 0.000000e+00 : f32
    %6 = vector.broadcast %cst_5 : f32 to vector<64x128xf32>
    %7 = arith.cmpf ogt, %5, %6 : vector<64x128xf32>
    %cst_6 = arith.constant 0.00999999977 : f32
    %8 = vector.broadcast %cst_6 : f32 to vector<64x128xf32>
    %9 = arith.mulf %8, %5 : vector<64x128xf32>
    %10 = arith.select %7, %5, %9 : vector<64x128xi1>, vector<64x128xf32>
    %c0_7 = arith.constant 0 : index
    %c0_8 = arith.constant 0 : index
    %11 = vector.load %arg4[%c0_7, %c0_8] : memref<32x64xf32, #tpu.memory_space<vmem>>, vector<32x64xf32>
    %cst_9 = arith.constant dense<0.000000e+00> : vector<32x128xf32>
    %12 = tpu.matmul %11, %10, %cst_9 {dimension_numbers = #tpu.dot_dimension_numbers<[1], [0], [0], [1], [0, 0, 1, 1], [], []>} : vector<32x64xf32>, vector<64x128xf32>, vector<32x128xf32> -> vector<32x128xf32>
    %c0_10 = arith.constant 0 : index
    %c0_11 = arith.constant 0 : index
    %13 = vector.load %arg5[%c0_10, %c0_11] : memref<32x1xf32, #tpu.memory_space<vmem>>, vector<32x1xf32>
    %14 = vector.broadcast %13 : vector<32x1xf32> to vector<32x128xf32>
    %15 = arith.addf %12, %14 : vector<32x128xf32>
    %cst_12 = arith.constant 0.000000e+00 : f32
    %16 = vector.broadcast %cst_12 : f32 to vector<32x128xf32>
    %17 = arith.cmpf ogt, %15, %16 : vector<32x128xf32>
    %cst_13 = arith.constant 0.00999999977 : f32
    %18 = vector.broadcast %cst_13 : f32 to vector<32x128xf32>
    %19 = arith.mulf %18, %15 : vector<32x128xf32>
    %20 = arith.select %17, %15, %19 : vector<32x128xi1>, vector<32x128xf32>
    %c0_14 = arith.constant 0 : index
    %c0_15 = arith.constant 0 : index
    %21 = vector.load %arg6[%c0_14, %c0_15] : memref<16x32xf32, #tpu.memory_space<vmem>>, vector<16x32xf32>
    %cst_16 = arith.constant dense<0.000000e+00> : vector<16x128xf32>
    %22 = tpu.matmul %21, %20, %cst_16 {dimension_numbers = #tpu.dot_dimension_numbers<[1], [0], [0], [1], [0, 0, 1, 1], [], []>} : vector<16x32xf32>, vector<32x128xf32>, vector<16x128xf32> -> vector<16x128xf32>
    %c0_17 = arith.constant 0 : index
    %c0_18 = arith.constant 0 : index
    %23 = vector.load %arg7[%c0_17, %c0_18] : memref<16x1xf32, #tpu.memory_space<vmem>>, vector<16x1xf32>
    %24 = vector.broadcast %23 : vector<16x1xf32> to vector<16x128xf32>
    %25 = arith.addf %22, %24 : vector<16x128xf32>
    %cst_19 = arith.constant 0.000000e+00 : f32
    %26 = vector.broadcast %cst_19 : f32 to vector<16x128xf32>
    %27 = arith.cmpf ogt, %25, %26 : vector<16x128xf32>
    %cst_20 = arith.constant 0.00999999977 : f32
    %28 = vector.broadcast %cst_20 : f32 to vector<16x128xf32>
    %29 = arith.mulf %28, %25 : vector<16x128xf32>
    %30 = arith.select %27, %25, %29 : vector<16x128xi1>, vector<16x128xf32>
    %c0_21 = arith.constant 0 : index
    %c0_22 = arith.constant 0 : index
    %31 = vector.load %arg8[%c0_21, %c0_22] : memref<1x16xf32, #tpu.memory_space<vmem>>, vector<1x16xf32>
    %cst_23 = arith.constant dense<0.000000e+00> : vector<1x128xf32>
    %32 = tpu.matmul %31, %30, %cst_23 {dimension_numbers = #tpu.dot_dimension_numbers<[1], [0], [0], [1], [0, 0, 1, 1], [], []>} : vector<1x16xf32>, vector<16x128xf32>, vector<1x128xf32> -> vector<1x128xf32>
    %c0_24 = arith.constant 0 : index
    %c0_25 = arith.constant 0 : index
    %33 = vector.load %arg9[%c0_24, %c0_25] : memref<1x1xf32, #tpu.memory_space<vmem>>, vector<1x1xf32>
    %34 = vector.broadcast %33 : vector<1x1xf32> to vector<1x128xf32>
    %35 = arith.addf %32, %34 : vector<1x128xf32>
    %36 = arith.negf %35 : vector<1x128xf32>
    %37 = math.exp %36 : vector<1x128xf32>
    %cst_26 = arith.constant 1.000000e+00 : f32
    %38 = vector.broadcast %cst_26 : f32 to vector<1x128xf32>
    %39 = arith.addf %38, %37 : vector<1x128xf32>
    %40 = arith.divf %38, %39 : vector<1x128xf32>
    %c0_27 = arith.constant 0 : index
    %c0_28 = arith.constant 0 : index
    %41 = vector.load %arg10[%c0_27, %c0_28] : memref<1x128xf32, #tpu.memory_space<vmem>>, vector<1x128xf32>
    tpu.vector_store %arg10[%c0_27, %c0_28], %40 {strides = array<i32>} : memref<1x128xf32, #tpu.memory_space<vmem>>, vector<1x128xf32>,
    return
  }
  func.func @transform_0(%arg0: i32) -> (i32, i32) {
    %c0_i32 = arith.constant 0 : i32
    %c0_i32_0 = arith.constant 0 : i32
    return %arg0, %c0_i32 : i32, i32
  }
  func.func @transform_1(%arg0: i32) -> (i32, i32) {
    %c0_i32 = arith.constant 0 : i32
    %c0_i32_0 = arith.constant 0 : i32
    %c0_i32_1 = arith.constant 0 : i32
    return %c0_i32, %c0_i32_0 : i32, i32
  }
  func.func @transform_2(%arg0: i32) -> (i32, i32) {
    %c0_i32 = arith.constant 0 : i32
    %c0_i32_0 = arith.constant 0 : i32
    %c0_i32_1 = arith.constant 0 : i32
    return %c0_i32, %c0_i32_0 : i32, i32
  }
  func.func @transform_3(%arg0: i32) -> (i32, i32) {
    %c0_i32 = arith.constant 0 : i32
    %c0_i32_0 = arith.constant 0 : i32
    %c0_i32_1 = arith.constant 0 : i32
    return %c0_i32, %c0_i32_0 : i32, i32
  }
  func.func @transform_4(%arg0: i32) -> (i32, i32) {
    %c0_i32 = arith.constant 0 : i32
    %c0_i32_0 = arith.constant 0 : i32
    %c0_i32_1 = arith.constant 0 : i32
    return %c0_i32, %c0_i32_0 : i32, i32
  }
  func.func @transform_5(%arg0: i32) -> (i32, i32) {
    %c0_i32 = arith.constant 0 : i32
    %c0_i32_0 = arith.constant 0 : i32
    %c0_i32_1 = arith.constant 0 : i32
    return %c0_i32, %c0_i32_0 : i32, i32
  }
  func.func @transform_6(%arg0: i32) -> (i32, i32) {
    %c0_i32 = arith.constant 0 : i32
    %c0_i32_0 = arith.constant 0 : i32
    %c0_i32_1 = arith.constant 0 : i32
    return %c0_i32, %c0_i32_0 : i32, i32
  }
  func.func @transform_7(%arg0: i32) -> (i32, i32) {
    %c0_i32 = arith.constant 0 : i32
    %c0_i32_0 = arith.constant 0 : i32
    %c0_i32_1 = arith.constant 0 : i32
    return %c0_i32, %c0_i32_0 : i32, i32
  }
  func.func @transform_8(%arg0: i32) -> (i32, i32) {
    %c0_i32 = arith.constant 0 : i32
    %c0_i32_0 = arith.constant 0 : i32
    %c0_i32_1 = arith.constant 0 : i32
    return %c0_i32, %c0_i32_0 : i32, i32
  }
  func.func @transform_9(%arg0: i32) -> (i32, i32) {
    %c0_i32 = arith.constant 0 : i32
    %c0_i32_0 = arith.constant 0 : i32
    return %c0_i32, %arg0 : i32, i32
  }
}

</mosaic_0001>

<bundles_post_ra>
// kernel: _pricing_model_forward.1
= control target key start
LH: loop header
LB: loop body
LE: loop exit
PB: predicated region body
PF: predicated region fallthrough
CT: control target
= control target key end

     0   :  { %s1314_s11 = smov 0   ;;  %s1493_s0 = inlined_call_operand.vmem [shape: f32[384,36], index: 0, kind: input, shape index: {}]   ;;  %s1494_s1 = inlined_call_operand.vmem [shape: f32[64,36], index: 1, kind: input, shape index: {}]   ;;  %s1495_s2 = inlined_call_operand.vmem [shape: f32[64,1], index: 2, kind: input, shape index: {}]   ;;  %s1496_s3 = inlined_call_operand.vmem [shape: f32[32,64], index: 3, kind: input, shape index: {}]   ;;  %s1497_s4 = inlined_call_operand.vmem [shape: f32[32,1], index: 4, kind: input, shape index: {}]   ;;  %s1498_s5 = inlined_call_operand.vmem [shape: f32[16,32], index: 5, kind: input, shape index: {}]   ;;  %s1499_s6 = inlined_call_operand.vmem [shape: f32[16,1], index: 6, kind: input, shape index: {}]   ;;  %s1500_s7 = inlined_call_operand.vmem [shape: f32[1,16], index: 7, kind: input, shape index: {}]   ;;  %s1501_s8 = inlined_call_operand.<no memory space> [shape: f32[1,1], index: 8, kind: input, shape index: {}]   ;;  %s1502_s9 = inlined_call_operand.vmem [shape: f32[1,384], index: 9, kind: output, shape index: {}]  }
   0x1   :  { %v14_v0 = vstv %s1501_s8 }
   0x2   :  { %15 = vst [vmem:[#allocation2] sm:$0x1] %v14_v0 }
   0x3 LB: > { %s1320_s12 = sadd.s32 4294967295, %s1255_s11   ;;  %p990_p0 = scmp.ge.s32.totalorder %s1255_s11, 1  ;;  %s1255_s11 = sphi %s1314_s11, %s21_s11  }
   0x4   : > { %p290_p1 = scmp.lt.s32.totalorder %s1255_s11, 4 }
   0x6   : > { %p291_p2 = pnand %p990_p0, %p290_p1 }
   0x7   : > { %s991_s13 = sshll.u32 (!%p291_p2), %s1320_s12, 4  ;;  %vm405_vm0 = vcmask (!%p291_p2), 293888   ;;  %v349_v1 = vld [vmem:[%s1494_s1] sm:$0xff] (!%p291_p2)  ;;  %v1257_v2 = vmov (!%p291_p2), 0   ;;  %v359_v4 = vld [vmem:[%s1495_s2 + $0x10] sm:$0xff] (!%p291_p2)  ;;  %v358_v5 = vld [vmem:[%s1495_s2 + $0x8] sm:$0xff] (!%p291_p2) }
   0x8   : > { %294 = sbr.rel (%p291_p2) target bundleno = 1013 (0x3f5), region = 56  ;;  %p325_p3 = scmp.lt.s32.totalorder (!%p291_p2), %s991_s13, 47  ;;  %1104 = vmatprep.mubr.msk.f32.mxu0 (!%p291_p2), %vm405_vm0, %v349_v1  ;;  %1243 = vset.pattern.permute.xlu0 (!%p291_p2), %v1257_v2  ;;  %v357_v3 = vld [vmem:[%s1495_s2] sm:$0xff] (!%p291_p2)  ;;  %v360_v6 = vld [vmem:[%s1495_s2 + $0x18] sm:$0xff] (!%p291_p2)  ;;  %vm1348_vm1 = vmpackc.low (!%p291_p2), %vm405_vm0, %vm405_vm0  ;;  %vm635_vm2 = vcmask (!%p291_p2), 523264   ;;  %vm759_vm11 = vcmask (!%p291_p2), 261120  }
   0x9   : > { %1244 = vset.pattern.permute.xlu1 (!%p291_p2), %v1257_v2  ;;  %367 = vperm.xlu0 (!%p291_p2), %1243, %v357_v3   ;;  %v361_v14 = vld [vmem:[%s1495_s2 + $0x20] sm:$0xff] (!%p291_p2)  ;;  %v362_v15 = vld [vmem:[%s1495_s2 + $0x28] sm:$0xff] (!%p291_p2)  ;;  %v363_v18 = vld [vmem:[%s1495_s2 + $0x30] sm:$0xff] (!%p291_p2)  ;;  %p330_p4 = scmp.lt.s32.totalorder (!%p291_p2), %s1320_s12, 2 }
   0xa   : > { %377 = vperm.xlu1 (!%p291_p2), %1244, %v359_v4   ;;  %v364_v19 = vld [vmem:[%s1495_s2 + $0x38] sm:$0xff] (!%p291_p2)  ;;  %v611_v21 = vld [vmem:[%s1497_s4] sm:$0xff] (!%p291_p2)  ;;  %v612_v22 = vld [vmem:[%s1497_s4 + $0x8] sm:$0xff] (!%p291_p2) }
   0xb   : > { %v613_v25 = vld [vmem:[%s1497_s4 + $0x10] sm:$0xff] (!%p291_p2)  ;;  %v614_v26 = vld [vmem:[%s1497_s4 + $0x18] sm:$0xff] (!%p291_p2)  ;;  %v747_v28 = vld [vmem:[%s1499_s6] sm:$0xff] (!%p291_p2) }
   0xc   : > { %v748_v29 = vld [vmem:[%s1499_s6 + $0x8] sm:$0xff] (!%p291_p2)  ;;  %v848_v32 = vld [vmem:[#allocation2] sm:$0x1] (!%p291_p2)  ;;  %v351_v44 = vld [vmem:[%s1494_s1 + $0x10] sm:$0xff] (!%p291_p2) }
   0xd   : > { %372 = vperm.xlu0 (!%p291_p2), %1243, %v358_v5   ;;  %v350_v43 = vld [vmem:[%s1494_s1 + $0x8] sm:$0xff] (!%p291_p2)  ;;  %v352_v45 = vld [vmem:[%s1494_s1 + $0x18] sm:$0xff] (!%p291_p2)  ;;  %v353_v46 = vld [vmem:[%s1494_s1 + $0x20] sm:$0xff] (!%p291_p2) }
   0xe   : > { %382 = vperm.xlu1 (!%p291_p2), %1244, %v360_v6   ;;  %v354_v47 = vld [vmem:[%s1494_s1 + $0x28] sm:$0xff] (!%p291_p2)  ;;  %v355_v48 = vld [vmem:[%s1494_s1 + $0x30] sm:$0xff] (!%p291_p2)  ;;  %v356_v49 = vld [vmem:[%s1494_s1 + $0x38] sm:$0xff] (!%p291_p2) }
   0xf   : > { %s1506_s13 = smov (!%p325_p3, %s991_s13), 47  ;;  %v607_v50 = vld [vmem:[%s1496_s3] sm:$0xff]  ;;  %s1508_s12 = smov (!%p330_p4, %s1320_s12), 2 }
  0x10   : > { %s992_s19 = sshll.u32 %s1506_s13, 3  ;;  %1132 = vmatprep.mubr.msk.f32.mxu1 %vm635_vm2, %v607_v50  ;;  %s332_s17 = scalar_lea.vmem %s1502_s9, %s1508_s12 }
  0x11   : > { %s1344_s26 = scalar_lea.vmem %s1493_s0, %s992_s19  ;;  %387 = vperm.xlu0 %1243, %v361_v14  }
  0x12   : > { %v333_v8 = vld [vmem:[%s1344_s26] sm:$0xff]  ;;  %v334_v9 = vld [vmem:[%s1344_s26 + $0x8] sm:$0xff]  ;;  %v335_v10 = vld [vmem:[%s1344_s26 + $0x10] sm:$0xff]  ;;  %392 = vperm.xlu1 %1244, %v362_v15  }
  0x13   : > { %v1156_v11 = vpack.c.bf16 %v334_v9, %v333_v8  ;;  %v336_v12 = vld [vmem:[%s1344_s26 + $0x18] sm:$0xff]  ;;  %v337_v16 = vld [vmem:[%s1344_s26 + $0x20] sm:$0xff]  ;;  %v338_v17 = vld [vmem:[%s1344_s26 + $0x28] sm:$0xff] }
  0x14   : > { %v1162_v13 = vpack.c.bf16 %v336_v12, %v335_v10  ;;  %v1168_v20 = vpack.c.bf16 %v338_v17, %v337_v16  ;;  %v339_v23 = vld [vmem:[%s1344_s26 + $0x30] sm:$0xff]  ;;  %v340_v24 = vld [vmem:[%s1344_s26 + $0x38] sm:$0xff]  ;;  %v341_v30 = vld [vmem:[%s1344_s26 + $0x40] sm:$0xff] }
  0x15   : > { %1158 = vmatprep.subr.msk.bf16.mxu0 %vm1348_vm1, %v1156_v11  ;;  %397 = vperm.xlu0 %1243, %v363_v18   ;;  %v1174_v27 = vpack.c.bf16 %v340_v24, %v339_v23  ;;  %v342_v31 = vld [vmem:[%s1344_s26 + $0x48] sm:$0xff]  ;;  %v343_v34 = vld [vmem:[%s1344_s26 + $0x50] sm:$0xff]  ;;  %v344_v35 = vld [vmem:[%s1344_s26 + $0x58] sm:$0xff] }
  0x16   : > { %1161 = vmatpush3.bf16.xpose.msk.msra.mxu0 %vm1348_vm1, %v1156_v11  ;;  %402 = vperm.xlu1 %1244, %v364_v19   ;;  %v1180_v33 = vpack.c.bf16 %v342_v31, %v341_v30  ;;  %v1186_v36 = vpack.c.bf16 %v344_v35, %v343_v34  ;;  %v345_v37 = vld [vmem:[%s1344_s26 + $0x60] sm:$0xff]  ;;  %v346_v38 = vld [vmem:[%s1344_s26 + $0x68] sm:$0xff]  ;;  %v347_v40 = vld [vmem:[%s1344_s26 + $0x70] sm:$0xff] }
  0x17   : > { %1164 = vmatprep.subr.msk.bf16.mxu0 %vm1348_vm1, %v1162_v13  ;;  %v1192_v39 = vpack.c.bf16 %v346_v38, %v345_v37  ;;  %v348_v41 = vld [vmem:[%s1344_s26 + $0x78] sm:$0xff]  ;;  %v608_v31 = vld [vmem:[%s1496_s3 + $0x8] sm:$0xff]  ;;  %v745_v34 = vld [vmem:[%s1498_s5] sm:$0xff] }
  0x18   : > { %v1198_v42 = vpack.c.bf16 %v348_v41, %v347_v40 }
  0x19   : > { %617 = vperm.xlu0 %1243, %v611_v21  }
  0x1a   : > { %622 = vperm.xlu1 %1244, %v612_v22  }
  0x1d   : > { %627 = vperm.xlu0 %1243, %v613_v25  }
  0x1e   : > { %1167 = vmatpush3.bf16.xpose.msk.msra.mxu0 %vm1348_vm1, %v1162_v13  ;;  %632 = vperm.xlu1 %1244, %v614_v26  }
  0x1f   : > { %1170 = vmatprep.subr.msk.bf16.mxu0 %vm1348_vm1, %v1168_v20 }
  0x21   : > { %751 = vperm.xlu0 %1243, %v747_v28  }
  0x22   : > { %756 = vperm.xlu1 %1244, %v748_v29  }
  0x25   : > { %851 = vperm.xlu0 %1243, %v848_v32   ;;  %v609_v32 = vld [vmem:[%s1496_s3 + $0x10] sm:$0xff] }
  0x26   : > { %1173 = vmatpush3.bf16.xpose.msk.msra.mxu0 %vm1348_vm1, %v1168_v20 }
  0x27   : > { %1176 = vmatprep.subr.msk.bf16.mxu0 %vm1348_vm1, %v1174_v27 }
  0x2e   : > { %1179 = vmatpush3.bf16.xpose.msk.msra.mxu0 %vm1348_vm1, %v1174_v27 }
  0x2f   : > { %1182 = vmatprep.subr.msk.bf16.mxu0 %vm1348_vm1, %v1180_v33 }
  0x36   : > { %1185 = vmatpush3.bf16.xpose.msk.msra.mxu0 %vm1348_vm1, %v1180_v33  ;;  %v610_v33 = vld [vmem:[%s1496_s3 + $0x18] sm:$0xff] }
  0x37   : > { %1188 = vmatprep.subr.msk.bf16.mxu0 %vm1348_vm1, %v1186_v36 }
  0x3e   : > { %1191 = vmatpush3.bf16.xpose.msk.msra.mxu0 %vm1348_vm1, %v1186_v36 }
  0x3f   : > { %1194 = vmatprep.subr.msk.bf16.mxu0 %vm1348_vm1, %v1192_v39 }
  0x46   : > { %1197 = vmatpush3.bf16.xpose.msk.msra.mxu0 %vm1348_vm1, %v1192_v39 }
  0x47   : > { %1200 = vmatprep.subr.msk.bf16.mxu0 %vm1348_vm1, %v1198_v42 }
  0x4e   : > { %1203 = vmatpush3.bf16.xpose.msk.msra.mxu0 %vm1348_vm1, %v1198_v42 }
  0x55   : > { %1105 = vmatmul.mubr.msk.f32.vlgmr.msra.gmra.mrb[0].mxu0 %vm405_vm0, %v350_v43 }
  0x56   : > { %1107 = vmatprep.mubr.msk.f32.mxu0 %vm405_vm0, %v351_v44 }
  0x59   : > { %1108 = vmatmul.mubr.msk.f32.gmra.mrb[2].mxu0 %vm405_vm0, %v352_v45 }
  0x5a   : > { %1110 = vmatprep.mubr.msk.f32.mxu0 %vm405_vm0, %v353_v46 }
  0x5d   : > { %1111 = vmatmul.mubr.msk.f32.gmra.mrb[4].mxu0 %vm405_vm0, %v354_v47 }
  0x5e   : > { %1113 = vmatprep.mubr.msk.f32.mxu0 %vm405_vm0, %v355_v48 }
  0x61   : > { %1114 = vmatmul.mubr.msk.f32.gmra.mrb[6].mxu0 %vm405_vm0, %v356_v49  ;;  %vm1259_vm0 = vmmov 0  }
  0x88   : > { %v368_v51 = vpop.permute.xlu0 %367 }
  0x89   : > { %v378_v52 = vpop.permute.xlu1 %377 }
  0x8c   : > { %v373_v53 = vpop.permute.xlu0 %372 }
  0x8d   : > { %v383_v54 = vpop.permute.xlu1 %382 }
  0x90   : > { %v388_v4 = vpop.permute.xlu0 %387 }
  0x91   : > { %v393_v1 = vpop.permute.xlu1 %392 }
  0x94   : > { %v398_v19 = vpop.permute.xlu0 %397 }
  0x95   : > { %v403_v16 = vpop.permute.xlu1 %402 }
  0x98   : > { %v618_v36 = vpop.permute.xlu0 %617 }
  0x99   : > { %v623_v35 = vpop.permute.xlu1 %622 }
  0x9c   : > { %v628_v45 = vpop.permute.xlu0 %627 }
  0x9d   : > { %v633_v42 = vpop.permute.xlu1 %632 }
 0x128   : > { %v1106_v55 = vpop.f32.mrb[0].mxu0 }
 0x129   : > { %v550_v56 = vadd.f32 %v1106_v55, %v373_v53  ;;  %v544_v57 = vpop.f32.mrb[1].mxu0 }
 0x12a   : > { %v545_v58 = vadd.f32 %v544_v57, %v368_v51  ;;  %v746_v57 = vld [vmem:[%s1498_s5 + $0x8] sm:$0xff] }
 0x12b   : > { %v592_v59 = vmul.f32 0.01, %v550_v56  ;;  %vm584_vm3 = vcmp.gt.f32.partialorder %v550_v56, 0.0 }
 0x12c   : > { %v591_v60 = vmul.f32 0.01, %v545_v58  ;;  %v1109_v61 = vpop.f32.mrb[2].mxu0  ;;  %vm583_vm4 = vcmp.gt.f32.partialorder %v545_v58, 0.0 }
 0x12d   : > { %v560_v62 = vadd.f32 %v1109_v61, %v383_v54  ;;  %v554_v63 = vpop.f32.mrb[3].mxu0  ;;  %v600_v0 = vsel %vm584_vm3, %v550_v56, %v592_v59  ;;  %v1260_v59 = vmov 0.0   ;;  %vm858_vm3 = vcmask 130048  }
 0x12e   : > { %v555_v2 = vadd.f32 %v554_v63, %v378_v52  ;;  %v599_v3 = vsel %vm583_vm4, %v545_v58, %v591_v60  ;;  %v1258_v58 = vmov 0.0|0.0   ;;  %v757_v60 = vpop.permute.xlu1 %756 }
 0x12f   : > { %vm586_vm5 = vcmp.gt.f32.partialorder %v560_v62, 0.0  ;;  %v594_v5 = vmul.f32 0.01, %v560_v62  ;;  %v1204_v6 = vpack.c.bf16 %v600_v0, %v599_v3 }
 0x130   : > { %vm585_vm6 = vcmp.gt.f32.partialorder %v555_v2, 0.0  ;;  %v593_v7 = vmul.f32 0.01, %v555_v2  ;;  %v1112_v8 = vpop.f32.mrb[4].mxu0 }
 0x131   : > { %v570_v9 = vadd.f32 %v1112_v8, %v393_v1  ;;  %v564_v10 = vpop.f32.mrb[5].mxu0  ;;  %1205 = vmatprep.subr.bf16.mxu1 %v1204_v6  ;;  %v602_v11 = vsel %vm586_vm5, %v560_v62, %v594_v5  ;;  %v752_v62 = vpop.permute.xlu0 %751  ;;  %v854_v8 = vlaneseq }
 0x132   : > { %v565_v12 = vadd.f32 %v564_v10, %v388_v4  ;;  %1207 = vmatpush3.bf16.msra.mxu1 %v1204_v6  ;;  %v601_v13 = vsel %vm585_vm6, %v555_v2, %v593_v7  ;;  %v847_v7 = vld [vmem:[%s1500_s7] sm:$0x1] }
 0x133   : > { %vm588_vm7 = vcmp.gt.f32.partialorder %v570_v9, 0.0  ;;  %v596_v14 = vmul.f32 0.01, %v570_v9  ;;  %v1208_v15 = vpack.c.bf16 %v602_v11, %v601_v13 }
 0x134   : > { %vm587_vm8 = vcmp.gt.f32.partialorder %v565_v12, 0.0  ;;  %v595_v17 = vmul.f32 0.01, %v565_v12  ;;  %v1115_v18 = vpop.f32.mrb[6].mxu0 }
 0x135   : > { %v580_v20 = vadd.f32 %v1115_v18, %v403_v16  ;;  %v574_v21 = vpop.f32.mrb[7].mxu0  ;;  %1209 = vmatprep.subr.bf16.mxu1 %v1208_v15  ;;  %v604_v22 = vsel %vm588_vm7, %v570_v9, %v596_v14  ;;  %v855_v9 = vshrl.u32 %v854_v8, 7  ;;  %v852_v11 = vpop.permute.xlu0 %851 }
 0x136   : > { %v575_v23 = vadd.f32 %v574_v21, %v398_v19  ;;  %1211 = vmatpush3.bf16.msra.mxu1 %v1208_v15  ;;  %v603_v24 = vsel %vm587_vm8, %v565_v12, %v595_v17 }
 0x137   : > { %vm590_vm9 = vcmp.gt.f32.partialorder %v580_v20, 0.0  ;;  %v598_v25 = vmul.f32 0.01, %v580_v20  ;;  %v1212_v26 = vpack.c.bf16 %v604_v22, %v603_v24  ;;  %v856_v10 = vsub.s32 0, %v855_v9 }
 0x138   : > { %vm589_vm10 = vcmp.gt.f32.partialorder %v575_v23, 0.0  ;;  %v597_v27 = vmul.f32 0.01, %v575_v23 }
 0x139   : > { %1213 = vmatprep.subr.bf16.mxu1 %v1212_v26  ;;  %v606_v28 = vsel %vm590_vm9, %v580_v20, %v598_v25  ;;  %v857_v12 = vrot.slane %v852_v11, %v856_v10 }
 0x13a   : > { %1215 = vmatpush3.bf16.msra.mxu1 %v1212_v26  ;;  %v605_v29 = vsel %vm589_vm10, %v575_v23, %v597_v27 }
 0x13b   : > { %v1216_v30 = vpack.c.bf16 %v606_v28, %v605_v29 }
 0x13d   : > { %1217 = vmatprep.subr.bf16.mxu1 %v1216_v30 }
 0x13e   : > { %1219 = vmatpush3.bf16.msra.mxu1 %v1216_v30 }
 0x141   : > { %1133 = vmatmul.mubr.msk.f32.vlgmr.msra.gmra.mrb[0].mxu1 %vm635_vm2, %v608_v31 }
 0x142   : > { %1135 = vmatprep.mubr.msk.f32.mxu1 %vm635_vm2, %v609_v32 }
 0x145   : > { %1136 = vmatmul.mubr.msk.f32.gmra.mrb[2].mxu1 %vm635_vm2, %v610_v33 }
 0x146   : > { %1146 = vmatprep.mubr.msk.f32.mxu1 %vm759_vm11, %v745_v34 }
 0x214   : > { %v1134_v37 = vpop.f32.mrb[0].mxu1 }
 0x215   : > { %v720_v38 = vadd.f32 %v1134_v37, %v623_v35  ;;  %v714_v39 = vpop.f32.mrb[1].mxu1 }
 0x216   : > { %v715_v40 = vadd.f32 %v714_v39, %v618_v36 }
 0x217   : > { %vm734_vm12 = vcmp.gt.f32.partialorder %v720_v38, 0.0  ;;  %v738_v41 = vmul.f32 0.01, %v720_v38 }
 0x218   : > { %vm733_vm13 = vcmp.gt.f32.partialorder %v715_v40, 0.0  ;;  %v737_v43 = vmul.f32 0.01, %v715_v40  ;;  %v1137_v44 = vpop.f32.mrb[2].mxu1 }
 0x219   : > { %v730_v46 = vadd.f32 %v1137_v44, %v633_v42  ;;  %v724_v47 = vpop.f32.mrb[3].mxu1  ;;  %v742_v48 = vsel %vm734_vm12, %v720_v38, %v738_v41 }
 0x21a   : > { %v725_v49 = vadd.f32 %v724_v47, %v628_v45  ;;  %v741_v50 = vsel %vm733_vm13, %v715_v40, %v737_v43 }
 0x21b   : > { %vm736_vm14 = vcmp.gt.f32.partialorder %v730_v46, 0.0  ;;  %v740_v51 = vmul.f32 0.01, %v730_v46  ;;  %v1220_v52 = vpack.c.bf16 %v742_v48, %v741_v50 }
 0x21c   : > { %vm735_vm15 = vcmp.gt.f32.partialorder %v725_v49, 0.0  ;;  %v739_v53 = vmul.f32 0.01, %v725_v49 }
 0x21d   : > { %1221 = vmatprep.subr.bf16.mxu1 %v1220_v52  ;;  %v744_v54 = vsel %vm736_vm14, %v730_v46, %v740_v51 }
 0x21e   : > { %1223 = vmatpush3.bf16.msra.mxu1 %v1220_v52  ;;  %v743_v55 = vsel %vm735_vm15, %v725_v49, %v739_v53 }
 0x21f   : > { %v1224_v56 = vpack.c.bf16 %v744_v54, %v743_v55 }
 0x221   : > { %1225 = vmatprep.subr.bf16.mxu1 %v1224_v56 }
 0x222   : > { %1227 = vmatpush3.bf16.msra.mxu1 %v1224_v56 }
 0x223   : > { %1228 = vmatprep.subr.bf16.mxu1 %v1258_v58 }
 0x225   : > { %1147 = vmatmul.mubr.msk.f32.vlgmr.msra.gmra.mrb[4].mxu1 %vm759_vm11, %v746_v57 }
 0x226   : > { %1153 = vmatprep.mubr.msk.f32.mxu1 %vm1259_vm0, %v1260_v59 }
 0x2f8   : > { %v1148_v61 = vpop.f32.mrb[4].mxu1 }
 0x2f9   : > { %v838_v63 = vadd.f32 %v1148_v61, %v757_v60  ;;  %v832_v0 = vpop.f32.mrb[5].mxu1 }
 0x2fa   : > { %v833_v1 = vadd.f32 %v832_v0, %v752_v62 }
 0x2fb   : > { %vm842_vm1 = vcmp.gt.f32.partialorder %v838_v63, 0.0  ;;  %v844_v2 = vmul.f32 0.01, %v838_v63 }
 0x2fc   : > { %vm841_vm2 = vcmp.gt.f32.partialorder %v833_v1, 0.0  ;;  %v843_v3 = vmul.f32 0.01, %v833_v1 }
 0x2fd   : > { %v846_v4 = vsel %vm842_vm1, %v838_v63, %v844_v2 }
 0x2fe   : > { %v845_v5 = vsel %vm841_vm2, %v833_v1, %v843_v3 }
 0x2ff   : > { %v1229_v6 = vpack.c.bf16 %v846_v4, %v845_v5 }
 0x301   : > { %1230 = vmatpush3.bf16.msra.mxu1 %v1229_v6 }
 0x304   : > { %1154 = vmatmul.mubr.msk.f32.vlgmr.msra.gmra.mrb[6].mxu1 %vm858_vm3, %v847_v7 }
 0x3d7   : > { %v928_v13 = vpop.f32.mrb[6].mxu1 }
 0x3d8   : > { %v929_v14 = vadd.f32 %v928_v13, %v857_v12  ;;  %v1155_v15 = vpop.f32.mrb[7].mxu1 }
 0x3da   : > { %v1024_v16 = vmul.f32 -1.442695, %v929_v14 }
 0x3dc   : > { %1245 = vpow2.f32 %v1024_v16 }
 0x3e6   : > { %v1246_v17 = vpop.eup %1245 }
 0x3e7   : > { %v935_v18 = vadd.f32 1.0, %v1246_v17 }
 0x3e9   : > { %1247 = vrcp.f32 %v935_v18 }
 0x3f3   : > { %v1248_v19 = vpop.eup %1247 }
 0x3f4   : > { %938 = vst [vmem:[%s332_s17] sm:$0x1] %v1248_v19 }
 0x3f5 PF: > { %s21_s11 = sadd.s32 1, %s1255_s11  }
 0x3f6   : > { %p18_p5 = scmp.ge.s32.totalorder %s21_s11, 5  }
 0x3f8   :  { %20 = sbr.rel (!%p18_p5) target bundleno = 3 (0x3), region = 86 }

</bundles_post_ra>
